<compile_context>
chip_gen: v6e
topology: v6e:2x2x1
jax: 0.10.0
libtpu: 0.0.40
codegen_flags: <defaults>
</compile_context>

<pallas_src>
import functools

import jax
import jax.numpy as jnp
from jax.experimental import pallas as pl
from jax.experimental.pallas import tpu as pltpu


def senet_kernel(x_ref, w1_ref, w2_ref, pool_ref, expand_ref, o_ref, *, inv_flow):
    """One batch tile. x_ref/o_ref are (tb, nf_pad), lane-dense."""
    x2 = x_ref[...]                                                   # (tb, nf_pad), input dtype

    # --- squeeze: sum over flow via the 0/1 pooling matrix (MXU, f32 acc),
    #     then apply the exact 1/flow scale in f32.
    #     (For f32 inputs this runs at default MXU precision; pass
    #      precision=HIGHEST here if a bit-tighter mean is ever required.)
    total = jnp.dot(x2, pool_ref[...], preferred_element_type=jnp.float32)      # (tb, n)
    avg = total * inv_flow

    # --- excitation: FC -> ReLU -> FC -> Sigmoid (tiny, f32; exp/recip on EUP) ---
    h = jnp.maximum(jnp.dot(avg, w1_ref[...], preferred_element_type=jnp.float32), 0.0)
    s = jax.nn.sigmoid(jnp.dot(h, w2_ref[...], preferred_element_type=jnp.float32))   # (tb, n)

    # --- scale: broadcast the gate back to (tb, nf_pad) via the 0/1 expansion
    #     matrix, then multiply in the input dtype (no widening of the big tensor).
    gate = jnp.dot(s, expand_ref[...], preferred_element_type=jnp.float32)      # (tb, nf_pad)
    o_ref[...] = (x2 * gate.astype(x2.dtype)).astype(o_ref.dtype)


def _round_up(v, m):
    return ((v + m - 1) // m) * m


def _pick_batch_tile(b, row_bytes, itemsize, target_bytes=4 << 20, min_steps=8):
    """Sublane-packed batch tile: large enough (~target_bytes) to amortize the
    per-step pipeline overhead, but capped so large batches still get
    >= min_steps grid iterations (prefetch/writeback overlap, 2-core balance)."""
    sub = {4: 8, 2: 16, 1: 32}.get(itemsize, 8)
    cap = max(sub, (target_bytes // max(row_bytes, 1)) // sub * sub)
    if b >= min_steps * sub:
        per_step = _round_up(-(-b // min_steps), sub)
        cap = min(cap, per_step)
    return max(sub, min(cap, _round_up(b, sub)))


def _const_spec(shape):
    # Constant block index every grid step -> DMA'd once; single-buffered.
    return pl.BlockSpec(shape, lambda i: (0, 0), pipeline_mode=pl.Buffered(1))


def senet_forward(x, w1_t, w2_t, *, batch_tile=None):
    """x: (b, n, flow); w1_t: (n, n//16); w2_t: (n//ratio, n) (Linear weights pre-transposed)."""
    b, n, flow = x.shape
    hidden = w1_t.shape[1]
    assert w1_t.shape == (n, hidden) and w2_t.shape == (hidden, n)

    nf = n * flow
    nf_pad = _round_up(nf, 128)                     # lane-dense output: unmasked full-width vst
    itemsize = jnp.dtype(x.dtype).itemsize

    if batch_tile is None:
        batch_tile = _pick_batch_tile(b, nf_pad * itemsize, itemsize)
    b_pad = _round_up(b, batch_tile)

    # Lane-dense view of the big tensor, padded on batch + lane axes if needed.
    x2d = x.reshape(b, nf)
    if b_pad != b or nf_pad != nf:
        x2d = jnp.pad(x2d, ((0, b_pad - b), (0, nf_pad - nf)))

    # Exact 0/1 pooling & expansion matrices in x.dtype (no precision loss;
    # halves the resident-constant footprint for bf16 inputs). The 1/flow
    # scale is applied in f32 inside the kernel.
    eye = jnp.eye(n, dtype=x.dtype)
    pool01 = jnp.repeat(eye, flow, axis=0)          # (nf, n)
    expand01 = jnp.repeat(eye, flow, axis=1)        # (n, nf)
    if nf_pad != nf:
        pool01 = jnp.pad(pool01, ((0, nf_pad - nf), (0, 0)))
        expand01 = jnp.pad(expand01, ((0, 0), (0, nf_pad - nf)))

    grid = (b_pad // batch_tile,)

    cost = pl.CostEstimate(
        flops=2 * b_pad * (nf_pad * n + n * hidden + hidden * n + n * nf_pad) + b_pad * nf_pad,
        transcendentals=b_pad * n,
        bytes_accessed=2 * b_pad * nf_pad * itemsize
        + (n * hidden + hidden * n) * jnp.dtype(w1_t.dtype).itemsize
        + 2 * n * nf_pad * itemsize,
    )

    kernel = functools.partial(senet_kernel, inv_flow=1.0 / flow)

    out2d = pl.pallas_call(
        kernel,
        out_shape=jax.ShapeDtypeStruct((b_pad, nf_pad), x.dtype),
        grid=grid,
        in_specs=[
            pl.BlockSpec((batch_tile, nf_pad), lambda i: (i, 0)),  # x tile: streamed & pipelined
            _const_spec((n, hidden)),                              # W1: resident, single-buffered
            _const_spec((hidden, n)),                              # W2: resident, single-buffered
            _const_spec((nf_pad, n)),                              # pool matrix: resident
            _const_spec((n, nf_pad)),                              # expand matrix: resident
        ],
        out_specs=pl.BlockSpec((batch_tile, nf_pad), lambda i: (i, 0)),
        compiler_params=pltpu.CompilerParams(
            dimension_semantics=("parallel",),      # both TCs on v7x; no-op elsewhere
            vmem_limit_bytes=48 << 20,              # fits 4 MiB tiles + constants on all gens
        ),
        cost_estimate=cost,
    )(x2d, w1_t, w2_t, pool01, expand01)

    if b_pad != b or nf_pad != nf:
        out2d = out2d[:b, :nf]
    return out2d.reshape(b, n, flow)


def senet_reference(x, w1_t, w2_t):
    """Pure-JAX reference mirroring the PyTorch forward."""
    xf = x.astype(jnp.float32)
    avg = jnp.mean(xf, axis=-1)
    h = jnp.maximum(avg @ w1_t.astype(jnp.float32), 0.0)
    s = jax.nn.sigmoid(h @ w2_t.astype(jnp.float32))
    return (xf * s[:, :, None]).astype(x.dtype)


if __name__ == "__main__":
    key = jax.random.PRNGKey(0)

    # --- Test 1: nominal sizes; force a 2-step grid to exercise pipelining ---
    b, n, flow = 16, 32, 16
    ratio = 16
    hidden = n // 16
    assert hidden >= 1 and n // ratio == hidden

    kx, k1, k2, kx2 = jax.random.split(key, 4)
    x = jax.random.normal(kx, (b, n, flow), dtype=jnp.float32)
    # PyTorch Linear weights are (out, in); stored transposed as (in, out).
    w1_t = jax.random.normal(k1, (n, hidden), dtype=jnp.float32) * 0.1
    w2_t = jax.random.normal(k2, (hidden, n), dtype=jnp.float32) * 0.1

    out = jax.block_until_ready(senet_forward(x, w1_t, w2_t, batch_tile=8))
    ref = senet_reference(x, w1_t, w2_t)
    assert out.shape == (b, n, flow)
    # Tolerance covers default-precision MXU accumulation of the f32 mean;
    # the gate lies in [0, 1] so the error is bounded well below this.
    assert jnp.allclose(out, ref, atol=2e-3, rtol=2e-3), "mismatch vs reference (test 1)"

    # --- Test 2: awkward shapes (prime batch, nf not a multiple of 128)
    #     to exercise the batch / lane padding path with auto tile selection ---
    b2, flow2 = 7, 10
    x2 = jax.random.normal(kx2, (b2, n, flow2), dtype=jnp.float32)
    out2 = jax.block_until_ready(senet_forward(x2, w1_t, w2_t))
    ref2 = senet_reference(x2, w1_t, w2_t)
    assert out2.shape == (b2, n, flow2)
    assert jnp.allclose(out2, ref2, atol=2e-3, rtol=2e-3), "mismatch vs reference (test 2)"

    print("KERNEL_OK")
</pallas_src>

<mosaic_0001>
module attributes {stable_mosaic.version = 11 : i64} {
  func.func @senet_kernel(%arg0: i32, %arg1: memref<8x512xf32, #tpu.memory_space<vmem>>, %arg2: memref<32x2xf32, #tpu.memory_space<vmem>>, %arg3: memref<2x32xf32, #tpu.memory_space<vmem>>, %arg4: memref<512x32xf32, #tpu.memory_space<vmem>>, %arg5: memref<32x512xf32, #tpu.memory_space<vmem>>, %arg6: memref<8x512xf32, #tpu.memory_space<vmem>>) attributes {dimension_semantics = [#tpu.dimension_semantics<parallel>], iteration_bounds = array<i64: 2>, scalar_prefetch = 0 : i64, scratch_operands = 0 : i64, tpu.core_type = #tpu.core_type<tc>, window_params = [{transform_indices = @transform_0, window_bounds = array<i64: 8, 512>}, {pipeline_mode = #tpu.pipeline_mode<synchronous>, transform_indices = @transform_1, window_bounds = array<i64: 32, 2>}, {pipeline_mode = #tpu.pipeline_mode<synchronous>, transform_indices = @transform_2, window_bounds = array<i64: 2, 32>}, {pipeline_mode = #tpu.pipeline_mode<synchronous>, transform_indices = @transform_3, window_bounds = array<i64: 512, 32>}, {pipeline_mode = #tpu.pipeline_mode<synchronous>, transform_indices = @transform_4, window_bounds = array<i64: 32, 512>}, {transform_indices = @transform_5, window_bounds = array<i64: 8, 512>}]} {
    %c0 = arith.constant 0 : index
    %c0_0 = arith.constant 0 : index
    %0 = vector.load %arg1[%c0, %c0_0] : memref<8x512xf32, #tpu.memory_space<vmem>>, vector<8x512xf32>
    %c0_1 = arith.constant 0 : index
    %c0_2 = arith.constant 0 : index
    %1 = vector.load %arg4[%c0_1, %c0_2] : memref<512x32xf32, #tpu.memory_space<vmem>>, vector<512x32xf32>
    %cst = arith.constant dense<0.000000e+00> : vector<8x32xf32>
    %2 = tpu.matmul %0, %1, %cst {dimension_numbers = #tpu.dot_dimension_numbers<[1], [0], [0], [1], [0, 0, 1, 1], [], []>} : vector<8x512xf32>, vector<512x32xf32>, vector<8x32xf32> -> vector<8x32xf32>
    %cst_3 = arith.constant 6.250000e-02 : f32
    %3 = vector.broadcast %cst_3 : f32 to vector<8x32xf32>
    %4 = arith.mulf %2, %3 : vector<8x32xf32>
    %c0_4 = arith.constant 0 : index
    %c0_5 = arith.constant 0 : index
    %5 = vector.load %arg2[%c0_4, %c0_5] : memref<32x2xf32, #tpu.memory_space<vmem>>, vector<32x2xf32>
    %cst_6 = arith.constant dense<0.000000e+00> : vector<8x2xf32>
    %6 = tpu.matmul %4, %5, %cst_6 {dimension_numbers = #tpu.dot_dimension_numbers<[1], [0], [0], [1], [0, 0, 1, 1], [], []>} : vector<8x32xf32>, vector<32x2xf32>, vector<8x2xf32> -> vector<8x2xf32>
    %cst_7 = arith.constant 0.000000e+00 : f32
    %7 = vector.broadcast %cst_7 : f32 to vector<8x2xf32>
    %8 = arith.maximumf %6, %7 : vector<8x2xf32>
    %c0_8 = arith.constant 0 : index
    %c0_9 = arith.constant 0 : index
    %9 = vector.load %arg3[%c0_8, %c0_9] : memref<2x32xf32, #tpu.memory_space<vmem>>, vector<2x32xf32>
    %cst_10 = arith.constant dense<0.000000e+00> : vector<8x32xf32>
    %10 = tpu.matmul %8, %9, %cst_10 {dimension_numbers = #tpu.dot_dimension_numbers<[1], [0], [0], [1], [0, 0, 1, 1], [], []>} : vector<8x2xf32>, vector<2x32xf32>, vector<8x32xf32> -> vector<8x32xf32>
    %11 = arith.negf %10 : vector<8x32xf32>
    %12 = math.exp %11 : vector<8x32xf32>
    %cst_11 = arith.constant 1.000000e+00 : f32
    %13 = vector.broadcast %cst_11 : f32 to vector<8x32xf32>
    %14 = arith.addf %13, %12 : vector<8x32xf32>
    %15 = arith.divf %13, %14 : vector<8x32xf32>
    %c0_12 = arith.constant 0 : index
    %c0_13 = arith.constant 0 : index
    %16 = vector.load %arg5[%c0_12, %c0_13] : memref<32x512xf32, #tpu.memory_space<vmem>>, vector<32x512xf32>
    %cst_14 = arith.constant dense<0.000000e+00> : vector<8x512xf32>
    %17 = tpu.matmul %15, %16, %cst_14 {dimension_numbers = #tpu.dot_dimension_numbers<[1], [0], [0], [1], [0, 0, 1, 1], [], []>} : vector<8x32xf32>, vector<32x512xf32>, vector<8x512xf32> -> vector<8x512xf32>
    %18 = arith.mulf %0, %17 : vector<8x512xf32>
    %c0_15 = arith.constant 0 : index
    %c0_16 = arith.constant 0 : index
    %19 = vector.load %arg6[%c0_15, %c0_16] : memref<8x512xf32, #tpu.memory_space<vmem>>, vector<8x512xf32>
    tpu.vector_store %arg6[%c0_15, %c0_16], %18 {strides = array<i32>} : memref<8x512xf32, #tpu.memory_space<vmem>>, vector<8x512xf32>,
    return
  }
  func.func @transform_0(%arg0: i32) -> (i32, i32) {
    %c0_i32 = arith.constant 0 : i32
    %c0_i32_0 = arith.constant 0 : i32
    return %arg0, %c0_i32 : i32, i32
  }
  func.func @transform_1(%arg0: i32) -> (i32, i32) {
    %c0_i32 = arith.constant 0 : i32
    %c0_i32_0 = arith.constant 0 : i32
    %c0_i32_1 = arith.constant 0 : i32
    return %c0_i32, %c0_i32_0 : i32, i32
  }
  func.func @transform_2(%arg0: i32) -> (i32, i32) {
    %c0_i32 = arith.constant 0 : i32
    %c0_i32_0 = arith.constant 0 : i32
    %c0_i32_1 = arith.constant 0 : i32
    return %c0_i32, %c0_i32_0 : i32, i32
  }
  func.func @transform_3(%arg0: i32) -> (i32, i32) {
    %c0_i32 = arith.constant 0 : i32
    %c0_i32_0 = arith.constant 0 : i32
    %c0_i32_1 = arith.constant 0 : i32
    return %c0_i32, %c0_i32_0 : i32, i32
  }
  func.func @transform_4(%arg0: i32) -> (i32, i32) {
    %c0_i32 = arith.constant 0 : i32
    %c0_i32_0 = arith.constant 0 : i32
    %c0_i32_1 = arith.constant 0 : i32
    return %c0_i32, %c0_i32_0 : i32, i32
  }
  func.func @transform_5(%arg0: i32) -> (i32, i32) {
    %c0_i32 = arith.constant 0 : i32
    %c0_i32_0 = arith.constant 0 : i32
    return %arg0, %c0_i32 : i32, i32
  }
}

</mosaic_0001>

<bundles_post_ra>
// kernel: tpu_custom_call.1
= control target key start
LH: loop header
LB: loop body
LE: loop exit
PB: predicated region body
PF: predicated region fallthrough
CT: control target
= control target key end

     0   :  { %10 = vsyncpa [#allocation3], 0  ;;  %s1464_s0 = inlined_call_operand.vmem [shape: f32[16,512], index: 0, kind: input, shape index: {}]   ;;  %s1465_s1 = inlined_call_operand.vmem [shape: f32[32,2], index: 1, kind: input, shape index: {}]   ;;  %s1466_s2 = inlined_call_operand.vmem [shape: f32[2,32], index: 2, kind: input, shape index: {}]   ;;  %s1467_s3 = inlined_call_operand.vmem [shape: f32[512,32], index: 3, kind: input, shape index: {}]   ;;  %s1468_s4 = inlined_call_operand.vmem [shape: f32[32,512], index: 4, kind: input, shape index: {}]   ;;  %s1469_s5 = inlined_call_operand.hbm [shape: f32[16,512], index: 5, kind: output, shape index: {}]  }
   0x1   :  { %12 = vsyncpa [#allocation3 + $0x1], 0  ;;  %s1092_s18 = smov 0   ;;  %s1094_s19 = smov 0  }
   0x2   :  { %s1096_s20 = smov 0   ;;  %s1098_s21 = smov 0  }
   0x3 LB: > { %s1113_s22 = sadd.s32 4294967295, %s1057_s21   ;;  %s839_s23 = sadd.s32 4294967294, %s1057_s21   ;;  %s1057_s21 = sphi %s1098_s21, %s1475_s21   ;;  %s1053_s20 = sphi %s1096_s20, %s1474_s20   ;;  %s1049_s19 = sphi %s1094_s19, %s1473_s19   ;;  %s1045_s18 = sphi %s1092_s18, %s1472_s18  }
   0x4   : > { %s1117_s24 = sadd.s32 1, %s1057_s21   ;;  %s135_s25 = sadd.s32 1, %s1053_s20 }
   0x5   : > { %s132_s26 = ssub.s32 %s1057_s21, %s1117_s24  ;;  %p145_p0 = scmp.ne.s32.totalorder %s1053_s20, %s1049_s19 }
   0x6   : > { %p133_p1 = scmp.eq.s32.totalorder %s132_s26, 0  ;;  %p146_p2 = scmp.eq.s32.totalorder %s1113_s22, 1 }
   0x7   : > { %p151_p3 = scmp.ne.s32.totalorder %s1049_s19, %s1045_s18  ;;  %p152_p4 = scmp.eq.s32.totalorder %s839_s23, 1 }
   0x8   : > { %s1128_s27 = scalar_select %p133_p1, %s1053_s20, %s135_s25  }
   0x9   : > { %p1130_p5 = por %p146_p2, %p145_p0  ;;  %p1134_p6 = por %p152_p4, %p151_p3 }
   0xa   : > { %p842_p7 = scmp.ge.s32.totalorder %s1057_s21, 1  ;;  %p190_p8 = scmp.lt.s32.totalorder %s1057_s21, 3 }
   0xc   : > { %p191_p9 = pnand %p842_p7, %p190_p8 }
   0xd   : > { %p218_p10 = scmp.lt.s32.totalorder (!%p191_p9), %s1113_s22, 1  ;;  %s215_s6 = sand.u32 (!%p191_p9), 1, %s1049_s19  }
   0xe   : > { %194 = sbr.rel (%p191_p9) target bundleno = 886 (0x376), region = 40  ;;  %s843_s7 = sshll.u32 (!%p191_p9), %s215_s6, 5 }
  0x13   : > { %v258_v0 = vld [vmem:[%s1467_s3 + $0xf8] sm:$0xff]  ;;  %v257_v4 = vld [vmem:[%s1467_s3 + $0xf0] sm:$0xff]  ;;  %v256_v8 = vld [vmem:[%s1467_s3 + $0xe8] sm:$0xff]  ;;  %s1276_s13 = scalar_select %p218_p10, %s1113_s22, 1  ;;  %vm1060_vm0 = vmmov 0   ;;  %vm516_vm1 = vcmask 1041408  }
  0x14   : > { %v290_v1 = vld [vmem:[%s1467_s3 + $0x1f8] sm:$0xff]  ;;  %859 = vmatprep.subr.mxu0 %v258_v0  ;;  %v289_v5 = vld [vmem:[%s1467_s3 + $0x1f0] sm:$0xff]  ;;  %v288_v9 = vld [vmem:[%s1467_s3 + $0x1e8] sm:$0xff]  ;;  %vm436_vm2 = vcmask 261120   ;;  %vm512_vm3 = vcmask 15360  }
  0x15   : > { %v242_v2 = vld [vmem:[%s1467_s3 + $0x78] sm:$0xff]  ;;  %894 = vmatprep.subr.mxu1 %v290_v1  ;;  %v241_v6 = vld [vmem:[%s1467_s3 + $0x70] sm:$0xff]  ;;  %v240_v10 = vld [vmem:[%s1467_s3 + $0x68] sm:$0xff]  ;;  %s857_s15 = sshll.u32 %s1276_s13, 5  ;;  %s217_s13 = scalar_lea.vmem [#allocation2], %s843_s7 }
  0x16   : > { %v274_v3 = vld [vmem:[%s1467_s3 + $0x178] sm:$0xff]  ;;  %860 = vmatpush3.msra.mxu0 %v242_v2  ;;  %v273_v7 = vld [vmem:[%s1467_s3 + $0x170] sm:$0xff]  ;;  %v272_v11 = vld [vmem:[%s1467_s3 + $0x168] sm:$0xff]  ;;  %s222_s14 = scalar_lea.vmem %s1464_s0, %s857_s15  ;;  %s858_s15 = sshll.u32 %s1113_s22, 9 }
  0x17   : > { %895 = vmatpush3.msra.mxu1 %v274_v3  ;;  %861 = vmatprep.subr.mxu0 %v257_v4  ;;  %v255_v12 = vld [vmem:[%s1467_s3 + $0xe0] sm:$0xff]  ;;  %v254_v16 = vld [vmem:[%s1467_s3 + $0xd8] sm:$0xff]  ;;  %v253_v20 = vld [vmem:[%s1467_s3 + $0xd0] sm:$0xff]  ;;  %v1059_v4 = vmov 0.0   ;;  %s780_s8 = sshll.u32 %s217_s13, 4  ;;  %s1429_s11 = scalar_lea.hbm %s1469_s5, %s858_s15  ;;  %s781_s8 = int_to_ptr.vmem [resolvable:$true] %s780_s8 }
  0x18   : > { %896 = vmatprep.subr.mxu1 %v289_v5  ;;  %862 = vmatpush3.msra.mxu0 %v241_v6  ;;  %v287_v13 = vld [vmem:[%s1467_s3 + $0x1e0] sm:$0xff]  ;;  %v286_v17 = vld [vmem:[%s1467_s3 + $0x1d8] sm:$0xff]  ;;  %v285_v21 = vld [vmem:[%s1467_s3 + $0x1d0] sm:$0xff]  ;;  %s766_s22 = scalar_lea.sflag [#allocation3], %s215_s6  ;;  %s997_s12 = scalar_lea.vmem %s781_s8, 512 }
  0x19   : > { %897 = vmatpush3.msra.mxu1 %v273_v7  ;;  %863 = vmatprep.subr.mxu0 %v256_v8  ;;  %v239_v14 = vld [vmem:[%s1467_s3 + $0x60] sm:$0xff]  ;;  %v238_v18 = vld [vmem:[%s1467_s3 + $0x58] sm:$0xff]  ;;  %v237_v22 = vld [vmem:[%s1467_s3 + $0x50] sm:$0xff]  ;;  %p998_p11 = scmp.ne.s32.totalorder %s781_s8, %s997_s12 }
  0x1a   : > { %898 = vmatprep.subr.mxu1 %v288_v9  ;;  %v271_v15 = vld [vmem:[%s1467_s3 + $0x160] sm:$0xff]  ;;  %864 = vmatpush3.msra.mxu0 %v240_v10  ;;  %v270_v19 = vld [vmem:[%s1467_s3 + $0x158] sm:$0xff]  ;;  %v269_v23 = vld [vmem:[%s1467_s3 + $0x150] sm:$0xff] }
  0x1b   : > { %899 = vmatpush3.msra.mxu1 %v272_v11  ;;  %865 = vmatprep.subr.mxu0 %v255_v12  ;;  %v252_v24 = vld [vmem:[%s1467_s3 + $0xc8] sm:$0xff]  ;;  %v251_v28 = vld [vmem:[%s1467_s3 + $0xc0] sm:$0xff]  ;;  %v250_v32 = vld [vmem:[%s1467_s3 + $0xb8] sm:$0xff]  ;;  %p999_p12 = pnand %p998_p11, %p1130_p5 }
  0x1c   : > { %900 = vmatprep.subr.mxu1 %v287_v13  ;;  %866 = vmatpush3.msra.mxu0 %v239_v14  ;;  %v284_v25 = vld [vmem:[%s1467_s3 + $0x1c8] sm:$0xff]  ;;  %v283_v29 = vld [vmem:[%s1467_s3 + $0x1c0] sm:$0xff]  ;;  %v282_v33 = vld [vmem:[%s1467_s3 + $0x1b8] sm:$0xff] }
  0x1d   : > { %901 = vmatpush3.msra.mxu1 %v271_v15  ;;  %867 = vmatprep.subr.mxu0 %v254_v16  ;;  %v236_v26 = vld [vmem:[%s1467_s3 + $0x48] sm:$0xff]  ;;  %v235_v30 = vld [vmem:[%s1467_s3 + $0x40] sm:$0xff]  ;;  %v234_v34 = vld [vmem:[%s1467_s3 + $0x38] sm:$0xff]  ;;  %p1000_p13 = pneg %p999_p12 }
  0x1e   : > { %902 = vmatprep.subr.mxu1 %v286_v17  ;;  %868 = vmatpush3.msra.mxu0 %v238_v18  ;;  %v268_v27 = vld [vmem:[%s1467_s3 + $0x148] sm:$0xff]  ;;  %v267_v31 = vld [vmem:[%s1467_s3 + $0x140] sm:$0xff]  ;;  %v266_v35 = vld [vmem:[%s1467_s3 + $0x138] sm:$0xff] }
  0x1f   : > { %903 = vmatpush3.msra.mxu1 %v270_v19  ;;  %869 = vmatprep.subr.mxu0 %v253_v20  ;;  %v249_v36 = vld [vmem:[%s1467_s3 + $0xb0] sm:$0xff]  ;;  %v248_v40 = vld [vmem:[%s1467_s3 + $0xa8] sm:$0xff]  ;;  %v247_v44 = vld [vmem:[%s1467_s3 + $0xa0] sm:$0xff] }
  0x20   : > { %904 = vmatprep.subr.mxu1 %v285_v21  ;;  %870 = vmatpush3.msra.mxu0 %v237_v22  ;;  %v281_v37 = vld [vmem:[%s1467_s3 + $0x1b0] sm:$0xff]  ;;  %v280_v41 = vld [vmem:[%s1467_s3 + $0x1a8] sm:$0xff]  ;;  %v279_v45 = vld [vmem:[%s1467_s3 + $0x1a0] sm:$0xff] }
  0x21   : > { %905 = vmatpush3.msra.mxu1 %v269_v23  ;;  %871 = vmatprep.subr.mxu0 %v252_v24  ;;  %v233_v38 = vld [vmem:[%s1467_s3 + $0x30] sm:$0xff]  ;;  %v232_v42 = vld [vmem:[%s1467_s3 + $0x28] sm:$0xff]  ;;  %v231_v46 = vld [vmem:[%s1467_s3 + $0x20] sm:$0xff] }
  0x22   : > { %906 = vmatprep.subr.mxu1 %v284_v25  ;;  %872 = vmatpush3.msra.mxu0 %v236_v26  ;;  %v265_v39 = vld [vmem:[%s1467_s3 + $0x130] sm:$0xff]  ;;  %v264_v43 = vld [vmem:[%s1467_s3 + $0x128] sm:$0xff]  ;;  %v263_v47 = vld [vmem:[%s1467_s3 + $0x120] sm:$0xff] }
  0x23   : > { %907 = vmatpush3.msra.mxu1 %v268_v27  ;;  %873 = vmatprep.subr.mxu0 %v251_v28  ;;  %v246_v48 = vld [vmem:[%s1467_s3 + $0x98] sm:$0xff]  ;;  %v245_v52 = vld [vmem:[%s1467_s3 + $0x90] sm:$0xff]  ;;  %v244_v56 = vld [vmem:[%s1467_s3 + $0x88] sm:$0xff] }
  0x24   : > { %908 = vmatprep.subr.mxu1 %v283_v29  ;;  %874 = vmatpush3.msra.mxu0 %v235_v30  ;;  %v278_v49 = vld [vmem:[%s1467_s3 + $0x198] sm:$0xff]  ;;  %v277_v53 = vld [vmem:[%s1467_s3 + $0x190] sm:$0xff]  ;;  %v276_v57 = vld [vmem:[%s1467_s3 + $0x188] sm:$0xff] }
  0x25   : > { %909 = vmatpush3.msra.mxu1 %v267_v31  ;;  %875 = vmatprep.subr.mxu0 %v250_v32  ;;  %v230_v50 = vld [vmem:[%s1467_s3 + $0x18] sm:$0xff]  ;;  %v229_v54 = vld [vmem:[%s1467_s3 + $0x10] sm:$0xff]  ;;  %v228_v58 = vld [vmem:[%s1467_s3 + $0x8] sm:$0xff] }
  0x26   : > { %910 = vmatprep.subr.mxu1 %v282_v33  ;;  %876 = vmatpush3.msra.mxu0 %v234_v34  ;;  %v262_v51 = vld [vmem:[%s1467_s3 + $0x118] sm:$0xff]  ;;  %v261_v55 = vld [vmem:[%s1467_s3 + $0x110] sm:$0xff]  ;;  %v260_v59 = vld [vmem:[%s1467_s3 + $0x108] sm:$0xff] }
  0x27   : > { %911 = vmatpush3.msra.mxu1 %v266_v35  ;;  %877 = vmatprep.subr.mxu0 %v249_v36  ;;  %v243_v60 = vld [vmem:[%s1467_s3 + $0x80] sm:$0xff]  ;;  %v1339_v63 = vld [vmem:[%s222_s14 + $0x8] sm:$0xff]  ;;  %v1344_v1 = vld [vmem:[%s222_s14 + $0x18] sm:$0xff] }
  0x28   : > { %912 = vmatprep.subr.mxu1 %v281_v37  ;;  %878 = vmatpush3.msra.mxu0 %v233_v38  ;;  %v275_v61 = vld [vmem:[%s1467_s3 + $0x180] sm:$0xff]  ;;  %v1348_v3 = vld [vmem:[%s222_s14 + $0x10] sm:$0xff]  ;;  %v435_v5 = vld [vmem:[%s1465_s1 + $0x18] sm:$0xff] }
  0x29   : > { %913 = vmatpush3.msra.mxu1 %v265_v39  ;;  %879 = vmatprep.subr.mxu0 %v248_v40  ;;  %v227_v62 = vld [vmem:[%s1467_s3] sm:$0xff]  ;;  %v434_v6 = vld [vmem:[%s1465_s1 + $0x10] sm:$0xff]  ;;  %v433_v7 = vld [vmem:[%s1465_s1 + $0x8] sm:$0xff] }
  0x2a   : > { %914 = vmatprep.subr.mxu1 %v280_v41  ;;  %880 = vmatpush3.msra.mxu0 %v232_v42  ;;  %v259_v0 = vld [vmem:[%s1467_s3 + $0x100] sm:$0xff]  ;;  %v609_v21 = vld [vmem:[%s1468_s4 + $0x68] sm:$0xff]  ;;  %v611_v22 = vld [vmem:[%s1468_s4 + $0x78] sm:$0xff] }
  0x2b   : > { %915 = vmatpush3.msra.mxu1 %v264_v43  ;;  %881 = vmatprep.subr.mxu0 %v247_v44  ;;  %v1346_v2 = vld [vmem:[%s222_s14] sm:$0xff]  ;;  %v610_v24 = vld [vmem:[%s1468_s4 + $0x70] sm:$0xff]  ;;  %v605_v25 = vld [vmem:[%s1468_s4 + $0x48] sm:$0xff]  ;;  %s1061_s14 = smov [#allocation2]  }
  0x2c   : > { %916 = vmatprep.subr.mxu1 %v279_v45  ;;  %882 = vmatpush3.msra.mxu0 %v231_v46  ;;  %v432_v8 = vld [vmem:[%s1465_s1] sm:$0xff]  ;;  %v607_v26 = vld [vmem:[%s1468_s4 + $0x58] sm:$0xff]  ;;  %v606_v28 = vld [vmem:[%s1468_s4 + $0x50] sm:$0xff]  ;;  %s1001_s16 = sshll.u32 %s1061_s14, 4  ;;  %s1002_s16 = int_to_ptr.vmem [resolvable:$false] %s1001_s16 }
  0x2d   : > { %917 = vmatpush3.msra.mxu1 %v263_v47  ;;  %883 = vmatprep.subr.mxu0 %v246_v48  ;;  %v511_v9 = vld [vmem:[%s1466_s2] sm:$0x3]  ;;  %v601_v29 = vld [vmem:[%s1468_s4 + $0x28] sm:$0xff]  ;;  %v603_v30 = vld [vmem:[%s1468_s4 + $0x38] sm:$0xff]  ;;  %s1003_s17 = scalar_lea.vmem %s1002_s16, 1024  ;;  %p1004_p0 = scmp.lt.s32.totalorder %s781_s8, %s1002_s16 }
  0x2e   : > { %918 = vmatprep.subr.mxu1 %v278_v49  ;;  %884 = vmatpush3.msra.mxu0 %v230_v50  ;;  %v608_v23 = vld [vmem:[%s1468_s4 + $0x60] sm:$0xff]  ;;  %v602_v32 = vld [vmem:[%s1468_s4 + $0x30] sm:$0xff]  ;;  %v597_v33 = vld [vmem:[%s1468_s4 + $0x8] sm:$0xff]  ;;  %p1005_p1 = scmp.lt.s32.totalorder %s1003_s17, %s997_s12 }
  0x2f   : > { %919 = vmatpush3.msra.mxu1 %v262_v51  ;;  %885 = vmatprep.subr.mxu0 %v245_v52  ;;  %v604_v27 = vld [vmem:[%s1468_s4 + $0x40] sm:$0xff]  ;;  %v599_v34 = vld [vmem:[%s1468_s4 + $0x18] sm:$0xff]  ;;  %v598_v36 = vld [vmem:[%s1468_s4 + $0x10] sm:$0xff] }
  0x30   : > { %920 = vmatprep.subr.mxu1 %v277_v53  ;;  %886 = vmatpush3.msra.mxu0 %v229_v54  ;;  %v600_v31 = vld [vmem:[%s1468_s4 + $0x20] sm:$0xff]  ;;  %p1006_p2 = por %p1005_p1, %p1004_p0 }
  0x31   : > { %921 = vmatpush3.msra.mxu1 %v261_v55  ;;  %887 = vmatprep.subr.mxu0 %v244_v56  ;;  %v596_v35 = vld [vmem:[%s1468_s4] sm:$0xff] }
  0x32   : > { %922 = vmatprep.subr.mxu1 %v276_v57  ;;  %888 = vmatpush3.msra.mxu0 %v228_v58  ;;  %p1007_p3 = pnand %p1006_p2, %p1000_p13 }
  0x33   : > { %923 = vmatpush3.msra.mxu1 %v260_v59  ;;  %889 = vmatprep.subr.mxu0 %v243_v60 }
  0x34   : > { %924 = vmatprep.subr.mxu1 %v275_v61  ;;  %890 = vmatpush3.msra.mxu0 %v227_v62 }
  0x35   : > { %355 = vmatprep.mubr.f32.mxu0 %v1339_v63  ;;  %925 = vmatpush3.msra.mxu1 %v259_v0 }
  0x36   : > { %425 = vmatprep.mubr.f32.mxu1 %v1344_v1  ;;  %356 = vmatmul.mubr.f32.vlgmr.msra.gmra.mxu0 %v1346_v2 }
  0x37   : > { %426 = vmatmul.mubr.f32.vlgmr.msra.gmra.mxu1 %v1348_v3  ;;  %936 = vmatprep.subr.mxu0 %v1059_v4 }
  0x38   : > { %947 = vmatprep.subr.mxu1 %v1059_v4  ;;  %937 = vmatpush3.msra.mxu0 %v435_v5 }
  0x39   : > { %938 = vmatprep.subr.mxu0 %v1059_v4  ;;  %944 = vmatprep.mubr.msk.f32.mxu0 %vm1060_vm0, %v1059_v4 }
  0x3a   : > { %939 = vmatpush3.msra.mxu0 %v434_v6  ;;  %949 = vmatprep.mubr.msk.f32.mxu1 %vm1060_vm0, %v1059_v4 }
  0x3b   : > { %940 = vmatprep.subr.mxu0 %v1059_v4  ;;  %948 = vmatpush3.msk.msra.mxu1 %vm516_vm1, %v511_v9 }
  0x3c   : > { %941 = vmatpush3.msra.mxu0 %v433_v7  ;;  %639 = vmatprep.subr.mxu1 %v609_v21 }
  0x3d   : > { %942 = vmatprep.subr.mxu0 %v1059_v4 }
  0x3e   : > { %943 = vmatpush3.msra.mxu0 %v432_v8 }
  0x3f   : > { %710 = vmatprep.subr.mxu0 %v611_v22 }
  0xf6   : > { %v891_v10 = vpop.f32.mrf.mxu0 }
  0xf7   : > { %v926_v11 = vpop.f32.mrf.mxu1 }
  0xf8   : > { %v892_v12 = vpop.f32.mrf.mxu0 }
  0xf9   : > { %v927_v13 = vpop.f32.mrf.mxu1  ;;  %v893_v14 = vadd.f32 %v892_v12, %v891_v10 }
  0xfa   : > { %v928_v15 = vadd.f32 %v927_v13, %v926_v11 }
  0xfc   : > { %v428_v16 = vadd.f32 %v928_v15, %v893_v14 }
  0xfe   : > { %v431_v17 = vmul.f32 0.0625, %v428_v16 }
 0x100   : > { %945 = vmatmul.mubr.msk.f32.vlgmr.msra.gmra.mxu0 %vm436_vm2, %v431_v17 }
 0x101   : > { %750 = vmatprep.mubr.f32.mxu0 %v1059_v4  ;;  %711 = vmatpush1.msra.mxu0 %v610_v24 }
 0x102   : > { %712 = vmatprep.subr.mxu0 %v607_v26 }
 0x103   : > { %713 = vmatpush1.msra.mxu0 %v606_v28 }
 0x104   : > { %714 = vmatprep.subr.mxu0 %v603_v30 }
 0x105   : > { %715 = vmatpush1.msra.mxu0 %v602_v32 }
 0x106   : > { %716 = vmatprep.subr.mxu0 %v599_v34 }
 0x107   : > { %717 = vmatpush1.msra.mxu0 %v598_v36 }
 0x1c0   : > { %v506_v18 = vpop.f32.mrf.mxu0 }
 0x1c1   : > { %v510_v19 = vmax.f32 %v506_v18, 0.0 }
 0x1c2   : > { %v946_v20 = vpop.f32.mrf.mxu0 }
 0x1c3   : > { %950 = vmatmul.mubr.msk.f32.vlgmr.msra.gmra.mxu1 %vm512_vm3, %v510_v19 }
 0x1c4   : > { %679 = vmatprep.mubr.f32.mxu1 %v1059_v4  ;;  %640 = vmatpush1.msra.mxu1 %v608_v23 }
 0x1c5   : > { %641 = vmatprep.subr.mxu1 %v605_v25 }
 0x1c6   : > { %642 = vmatpush1.msra.mxu1 %v604_v27 }
 0x1c7   : > { %643 = vmatprep.subr.mxu1 %v601_v29 }
 0x1c8   : > { %644 = vmatpush1.msra.mxu1 %v600_v31 }
 0x1c9   : > { %645 = vmatprep.subr.mxu1 %v597_v33 }
 0x1ca   : > { %646 = vmatpush1.msra.mxu1 %v596_v35 }
 0x283   : > { %v586_v37 = vpop.f32.mrf.mxu1 }
 0x284   : > { %v849_v38 = vmul.f32 -1.442695, %v586_v37 }
 0x285   : > { %v951_v39 = vpop.f32.mrf.mxu1 }
 0x286   : > { %993 = vpow2.f32 %v849_v38 }
 0x293   : > { %v994_v40 = vpop.eup %993 }
 0x294   : > { %v593_v41 = vadd.f32 1.0, %v994_v40 }
 0x296   : > { %995 = vrcp.f32 %v593_v41 }
 0x2a3   : > { %v996_v42 = vpop.eup %995 }
 0x2a4   : > { %850 = vmatmul.mubr.msk.f32.vlgmr.msra.gmra.mxu1 %vm436_vm2, %v996_v42  ;;  %851 = vmatmul.mubr.msk.f32.vlgmr.msra.gmra.mxu0 %vm436_vm2, %v996_v42 }
 0x364   : > { %v681_v43 = vpop.f32.mrf.mxu1  ;;  %v752_v44 = vpop.f32.mrf.mxu0 }
 0x365   : > { %v757_v45 = vmul.f32 %v681_v43, %v1346_v2  ;;  %v759_v46 = vmul.f32 %v752_v44, %v1348_v3 }
 0x366   : > { %v683_v47 = vpop.f32.mrf.mxu1  ;;  %v754_v48 = vpop.f32.mrf.mxu0 }
 0x367   : > { %761 = vst [vmem:[%s217_s13] sm:$0xff] %v757_v45  ;;  %763 = vst [vmem:[%s217_s13 + $0x10] sm:$0xff] %v759_v46  ;;  %v758_v49 = vmul.f32 %v683_v47, %v1339_v63  ;;  %v760_v50 = vmul.f32 %v754_v48, %v1344_v1 }
 0x369   : > { %762 = vst [vmem:[%s217_s13 + $0x8] sm:$0xff] %v758_v49  ;;  %764 = vst [vmem:[%s217_s13 + $0x18] sm:$0xff] %v760_v50 }
 0x36a   : > { %1010 = shalt.err (!%p1007_p3)
}
 0x36b   : > { %s1011_s23 = scalar_lea.hbm %s1429_s11, 512  ;;  %s1015_s30 = scalar_lea.hbm %s1469_s5, 1024 }
 0x36c   : > { %p1012_p4 = scmp.ne.s32.totalorder %s1429_s11, %s1011_s23  ;;  %p1016_p9 = scmp.lt.s32.totalorder %s1429_s11, %s1469_s5 }
 0x36d   : > { %p1017_p10 = scmp.lt.s32.totalorder %s1015_s30, %s1011_s23 }
 0x36e   : > { %p1013_p7 = pnand %p1012_p4, %p1130_p5 }
 0x36f   : > { %p1018_p11 = por %p1017_p10, %p1016_p9 }
 0x370   : > { %p1014_p8 = pneg %p1013_p7 }
 0x372   : > { %p1019_p12 = pnand %p1018_p11, %p1014_p8 }
 0x374   : > { %1022 = shalt.err (!%p1019_p12)
}
 0x375   : > { %952 = dma.vmem_to_hbm [thread:$0]  (%p1130_p5), %s781_s8, 512, %s1429_s11, %s766_s22  }
 0x376 PF: > { %p958_p13 = scmp.ge.s32.totalorder %s1057_s21, 2  ;;  %s792_s15 = sand.u32 1, %s1045_s18  }
 0x377   : > { %s793_s13 = scalar_lea.sflag [#allocation3], %s792_s15 }
 0x378   : > { %p955_p0 = pnand %p958_p13, %p1134_p6 }
 0x37a   : > { %p956_p1 = pneg %p955_p0 }
 0x37c   : > { %1040 = dma.done.wait (%p956_p1), %s793_s13, 512  }
 0x37d   : > { %1042 = vsyncadd (%p956_p1), %s793_s13, 4294966784  ;;  %p15_p2 = scmp.ge.s32.totalorder %s1117_s24, 4   ;;  %s1472_s18 = smov %s1049_s19 }
 0x37e   : > { %s1473_s19 = smov %s1053_s20  ;;  %s1474_s20 = smov %s1128_s27 }
 0x37f   : > { %s1475_s21 = smov %s1117_s24  ;;  %17 = sbr.rel (!%p15_p2) target bundleno = 3 (0x3), region = 75 }
 0x384   :  { %798 = vsyncpa [#allocation3], 1 }
 0x385   :  { %800 = vsyncpa [#allocation3 + $0x1], 1 }

</bundles_post_ra>
